<compile_context>
chip_gen: v6e
topology: v6e:2x2x1
jax: 0.10.0
libtpu: 0.0.40
codegen_flags: <defaults>
</compile_context>

<pallas_src>
import math

import numpy as np
import jax
import jax.numpy as jnp
from jax.experimental import pallas as pl
from jax.experimental.pallas import tpu as pltpu

D_MODEL = 16
D_FF = 16
HEADS = 1                      # TransformerEncoderLayer is built with heads=1
DPH = D_MODEL // HEADS
EPS = 1e-6                     # matches nn.LayerNorm(..., eps=1e-06)

# Packed parameter slab layout (single fp32 array -> single DMA):
#   rows 0..15 : weight columns [Wq*s | Wk | Wv | Wf | W1 | W2]   (16, 96)
#   row  16    : bias   columns [bq*s | bk | bv | bf | b1 | b2]   ( 1, 96)
#   rows 17..20: ln1_gamma, ln1_beta, ffn_ln_gamma, ffn_ln_beta (each padded to 96)
# with s = 1/sqrt(dim_per_head) folded into the Q projection.
_OFF_QKV = 0
_OFF_F = 3 * D_MODEL                      # 48
_OFF_W1 = 4 * D_MODEL                     # 64
_OFF_W2 = 4 * D_MODEL + D_FF              # 80
_SLAB_W = 4 * D_MODEL + D_FF + D_MODEL    # 96
_ROW_B = D_MODEL                          # 16
_ROW_LN1_G = _ROW_B + 1
_ROW_LN1_B = _ROW_B + 2
_ROW_FFN_G = _ROW_B + 3
_ROW_FFN_B = _ROW_B + 4
_SLAB_ROWS = _ROW_B + 5                   # 21


def _layer_norm(x, g, b):
    mu = jnp.mean(x, axis=-1, keepdims=True)
    var = jnp.mean((x - mu) ** 2, axis=-1, keepdims=True)
    return (x - mu) * jax.lax.rsqrt(var + EPS) * g + b


def _softmax(x):
    m = jnp.max(x, axis=-1, keepdims=True)
    e = jnp.exp(x - m)
    return e / jnp.sum(e, axis=-1, keepdims=True)


def encoder_layer_kernel(x_ref, p_ref, out_ref, attn_ref):
    B, H, S, _ = attn_ref.shape
    D = x_ref.shape[-1]

    x = x_ref[...].astype(jnp.float32)                      # (B*S, D)

    # ---- parameters: load each slice of the packed slab once ----
    ln1_g = p_ref[_ROW_LN1_G:_ROW_LN1_G + 1, 0:D]
    ln1_b = p_ref[_ROW_LN1_B:_ROW_LN1_B + 1, 0:D]
    ffn_g = p_ref[_ROW_FFN_G:_ROW_FFN_G + 1, 0:D]
    ffn_b = p_ref[_ROW_FFN_B:_ROW_FFN_B + 1, 0:D]

    w_qkv = p_ref[0:D, _OFF_QKV:_OFF_F]                     # (D, 3D), Wq pre-scaled
    b_qkv = p_ref[_ROW_B:_ROW_B + 1, _OFF_QKV:_OFF_F]
    wf = p_ref[0:D, _OFF_F:_OFF_W1]
    bf = p_ref[_ROW_B:_ROW_B + 1, _OFF_F:_OFF_W1]
    w1 = p_ref[0:D, _OFF_W1:_OFF_W2]
    b1 = p_ref[_ROW_B:_ROW_B + 1, _OFF_W1:_OFF_W2]
    w2 = p_ref[0:D, _OFF_W2:_SLAB_W]
    b2 = p_ref[_ROW_B:_ROW_B + 1, _OFF_W2:_SLAB_W]

    # ---- layer_norm(inputs) on all B*S rows at once ----
    xn = _layer_norm(x, ln1_g, ln1_b)

    # ---- fused QKV projection: one MXU matmul (scale folded into Wq/bq) ----
    qkv = jnp.dot(xn, w_qkv, preferred_element_type=jnp.float32) + b_qkv
    q = qkv[:, 0:D]
    k = qkv[:, D:2 * D]
    v = qkv[:, 2 * D:3 * D]

    # ---- per-batch attention tail, writing rows straight into out_ref ----
    for b in range(B):                                      # static unroll (B tiny)
        rs = slice(b * S, (b + 1) * S)
        head_parts = []
        for h in range(H):                                  # static unroll (H == 1)
            cs = slice(h * DPH, (h + 1) * DPH)
            qh = q[rs, cs]                                  # already scaled
            kh = k[rs, cs]
            vh = v[rs, cs]
            # scores = (Qs.K^T + K.Qs^T)/2 ; second term is the transpose of
            # the first, so compute the score matmul only once.
            s0 = jnp.dot(qh, kh.T, preferred_element_type=jnp.float32)
            scores = (s0 + s0.T) * 0.5
            a = _softmax(scores)
            a = (a + a.T) * 0.5                             # symmetrized attention
            attn_ref[b, h] = a                              # w_local
            # dropout(attn) is identity in eval mode
            head_parts.append(jnp.dot(a, vh, preferred_element_type=jnp.float32))
        ctx = head_parts[0] if H == 1 else jnp.concatenate(head_parts, axis=-1)

        attn_out = jnp.dot(ctx, wf, preferred_element_type=jnp.float32) + bf
        # out = dropout(context) + inputs   (dropout == identity)
        out1 = attn_out + x[rs]

        # ---- PositionwiseFeedForward ----
        yn = _layer_norm(out1, ffn_g, ffn_b)
        inter = jnp.maximum(
            jnp.dot(yn, w1, preferred_element_type=jnp.float32) + b1, 0.0)
        ffn = jnp.dot(inter, w2, preferred_element_type=jnp.float32) + b2
        out_ref[rs, :] = (ffn + out1).astype(out_ref.dtype)


def pack_params(params):
    """Pack all 16 parameter arrays into one fp32 slab. Call ONCE at init."""
    scale = 1.0 / math.sqrt(DPH)
    w = jnp.concatenate([params["wq"] * scale, params["wk"], params["wv"],
                         params["wf"], params["w1"], params["w2"]], axis=1)   # (16, 96)
    b = jnp.concatenate([params["bq"] * scale, params["bk"], params["bv"],
                         params["bf"], params["b1"], params["b2"]], axis=1)   # (1, 96)

    def pad_row(r):
        return jnp.pad(r, ((0, 0), (0, _SLAB_W - D_MODEL)))

    ln = jnp.concatenate([pad_row(params["ln1_g"]), pad_row(params["ln1_b"]),
                          pad_row(params["ffn_ln_g"]), pad_row(params["ffn_ln_b"])],
                         axis=0)                                              # (4, 96)
    slab = jnp.concatenate([w, b, ln], axis=0).astype(jnp.float32)            # (21, 96)
    assert slab.shape == (_SLAB_ROWS, _SLAB_W)
    return slab


def transformer_encoder_layer(query, inputs, param_slab, mask=None):
    """query is unused (matches the PyTorch forward); mask=None supported only."""
    # TODO(synk): attention-mask path (masked_fill with -1e18) not implemented;
    # the module is exercised with mask=None.
    del query
    assert mask is None
    B, S, D = inputs.shape
    assert D == D_MODEL and D_MODEL == D_FF   # slab packing assumes equal widths

    # Flatten/unflatten at the HBM level (metadata-only); kernel sees 2-D blocks.
    x2d = inputs.reshape(B * S, D)

    out_shape = (
        jax.ShapeDtypeStruct((B * S, D), inputs.dtype),
        jax.ShapeDtypeStruct((B, HEADS, S, S), jnp.float32),
    )

    out2d, w_local = pl.pallas_call(
        encoder_layer_kernel,
        out_shape=out_shape,
        grid_spec=pltpu.PrefetchScalarGridSpec(
            num_scalar_prefetch=0,
            grid=(1,),                                   # single step: overhead-bound
            in_specs=[
                pl.BlockSpec((B * S, D), lambda i: (0, 0)),
                pl.BlockSpec((_SLAB_ROWS, _SLAB_W), lambda i: (0, 0)),
            ],
            out_specs=[
                pl.BlockSpec((B * S, D), lambda i: (0, 0)),
                pl.BlockSpec((B, HEADS, S, S), lambda i: (0, 0, 0, 0)),
            ],
        ),
        compiler_params=pltpu.CompilerParams(
            dimension_semantics=("arbitrary",)),
    )(x2d, param_slab)
    return out2d.reshape(B, S, D), w_local


# ---------------- pure-JAX reference (for correctness check) ----------------
def reference(inputs, params):
    x = inputs
    xn = _layer_norm(x, params["ln1_g"], params["ln1_b"])
    q = xn @ params["wq"] + params["bq"]
    k = xn @ params["wk"] + params["bk"]
    v = xn @ params["wv"] + params["bv"]
    B, S, _ = x.shape
    qh = q.reshape(B, S, HEADS, DPH).transpose(0, 2, 1, 3) / math.sqrt(DPH)
    kh = k.reshape(B, S, HEADS, DPH).transpose(0, 2, 1, 3)
    vh = v.reshape(B, S, HEADS, DPH).transpose(0, 2, 1, 3)
    scores = (jnp.einsum("bhqd,bhkd->bhqk", qh, kh)
              + jnp.einsum("bhkd,bhqd->bhkq", kh, qh)) * 0.5
    a = jax.nn.softmax(scores, axis=-1)
    a = (a + jnp.swapaxes(a, 2, 3)) * 0.5
    ctx = jnp.einsum("bhqk,bhkd->bhqd", a, vh)
    ctx = ctx.transpose(0, 2, 1, 3).reshape(B, S, D_MODEL)
    attn_out = ctx @ params["wf"] + params["bf"]
    out1 = attn_out + x
    yn = _layer_norm(out1, params["ffn_ln_g"], params["ffn_ln_b"])
    inter = jnp.maximum(yn @ params["w1"] + params["b1"], 0.0)
    ffn = inter @ params["w2"] + params["b2"]
    return ffn + out1, a


def init_params(key):
    ks = jax.random.split(key, 12)
    u = lambda k, shape, bound: jax.random.uniform(k, shape, jnp.float32, -bound, bound)
    bd = 1.0 / math.sqrt(D_MODEL)
    bf = 1.0 / math.sqrt(D_FF)
    return {
        "wq": u(ks[0], (D_MODEL, D_MODEL), bd), "bq": u(ks[1], (1, D_MODEL), bd),
        "wk": u(ks[2], (D_MODEL, D_MODEL), bd), "bk": u(ks[3], (1, D_MODEL), bd),
        "wv": u(ks[4], (D_MODEL, D_MODEL), bd), "bv": u(ks[5], (1, D_MODEL), bd),
        "wf": u(ks[6], (D_MODEL, D_MODEL), bd), "bf": u(ks[7], (1, D_MODEL), bd),
        "ln1_g": jnp.ones((1, D_MODEL), jnp.float32),
        "ln1_b": jnp.zeros((1, D_MODEL), jnp.float32),
        "ffn_ln_g": jnp.ones((1, D_MODEL), jnp.float32),
        "ffn_ln_b": jnp.zeros((1, D_MODEL), jnp.float32),
        "w1": u(ks[8], (D_MODEL, D_FF), bd), "b1": u(ks[9], (1, D_FF), bd),
        "w2": u(ks[10], (D_FF, D_MODEL), bf), "b2": u(ks[11], (1, D_MODEL), bf),
    }


if __name__ == "__main__":
    key = jax.random.PRNGKey(0)
    kx, kq, kp = jax.random.split(key, 3)
    B, S = 2, 8
    inputs = jax.random.normal(kx, (B, S, D_MODEL), jnp.float32)
    query = jax.random.normal(kq, (B, S, D_MODEL), jnp.float32)   # unused by forward
    params = init_params(kp)

    # Pack parameters ONCE at init (outside the per-call path).
    param_slab = jax.block_until_ready(pack_params(params))

    out, w_local = transformer_encoder_layer(query, inputs, param_slab)
    out = jax.block_until_ready(out)
    w_local = jax.block_until_ready(w_local)

    ref_out, ref_attn = reference(inputs, params)
    np.testing.assert_allclose(np.asarray(out), np.asarray(ref_out), rtol=1e-5, atol=1e-5)
    np.testing.assert_allclose(np.asarray(w_local), np.asarray(ref_attn), rtol=1e-5, atol=1e-5)

    print("KERNEL_OK")
</pallas_src>

<mosaic_0001>
module attributes {stable_mosaic.version = 11 : i64} {
  func.func @encoder_layer_kernel(%arg0: i32, %arg1: memref<16x16xf32, #tpu.memory_space<vmem>>, %arg2: memref<21x96xf32, #tpu.memory_space<vmem>>, %arg3: memref<16x16xf32, #tpu.memory_space<vmem>>, %arg4: memref<2x1x8x8xf32, #tpu.memory_space<vmem>>) attributes {dimension_semantics = [#tpu.dimension_semantics<arbitrary>], iteration_bounds = array<i64: 1>, scalar_prefetch = 0 : i64, scratch_operands = 0 : i64, tpu.core_type = #tpu.core_type<tc>, window_params = [{pipeline_mode = #tpu.pipeline_mode<synchronous>, transform_indices = @transform_0, window_bounds = array<i64: 16, 16>}, {pipeline_mode = #tpu.pipeline_mode<synchronous>, transform_indices = @transform_1, window_bounds = array<i64: 21, 96>}, {pipeline_mode = #tpu.pipeline_mode<synchronous>, transform_indices = @transform_2, window_bounds = array<i64: 16, 16>}, {pipeline_mode = #tpu.pipeline_mode<synchronous>, transform_indices = @transform_3, window_bounds = array<i64: 2, 1, 8, 8>}]} {
    %c0 = arith.constant 0 : index
    %c0_0 = arith.constant 0 : index
    %0 = vector.load %arg1[%c0, %c0_0] : memref<16x16xf32, #tpu.memory_space<vmem>>, vector<16x16xf32>
    %c17 = arith.constant 17 : index
    %c0_1 = arith.constant 0 : index
    %1 = vector.load %arg2[%c17, %c0_1] : memref<21x96xf32, #tpu.memory_space<vmem>>, vector<1x16xf32>
    %c18 = arith.constant 18 : index
    %c0_2 = arith.constant 0 : index
    %2 = vector.load %arg2[%c18, %c0_2] : memref<21x96xf32, #tpu.memory_space<vmem>>, vector<1x16xf32>
    %c19 = arith.constant 19 : index
    %c0_3 = arith.constant 0 : index
    %3 = vector.load %arg2[%c19, %c0_3] : memref<21x96xf32, #tpu.memory_space<vmem>>, vector<1x16xf32>
    %c20 = arith.constant 20 : index
    %c0_4 = arith.constant 0 : index
    %4 = vector.load %arg2[%c20, %c0_4] : memref<21x96xf32, #tpu.memory_space<vmem>>, vector<1x16xf32>
    %c0_5 = arith.constant 0 : index
    %c0_6 = arith.constant 0 : index
    %5 = vector.load %arg2[%c0_5, %c0_6] : memref<21x96xf32, #tpu.memory_space<vmem>>, vector<16x48xf32>
    %c16 = arith.constant 16 : index
    %c0_7 = arith.constant 0 : index
    %6 = vector.load %arg2[%c16, %c0_7] : memref<21x96xf32, #tpu.memory_space<vmem>>, vector<1x48xf32>
    %c0_8 = arith.constant 0 : index
    %c48 = arith.constant 48 : index
    %7 = vector.load %arg2[%c0_8, %c48] : memref<21x96xf32, #tpu.memory_space<vmem>>, vector<16x16xf32>
    %c16_9 = arith.constant 16 : index
    %c48_10 = arith.constant 48 : index
    %8 = vector.load %arg2[%c16_9, %c48_10] : memref<21x96xf32, #tpu.memory_space<vmem>>, vector<1x16xf32>
    %c0_11 = arith.constant 0 : index
    %c64 = arith.constant 64 : index
    %9 = vector.load %arg2[%c0_11, %c64] : memref<21x96xf32, #tpu.memory_space<vmem>>, vector<16x16xf32>
    %c16_12 = arith.constant 16 : index
    %c64_13 = arith.constant 64 : index
    %10 = vector.load %arg2[%c16_12, %c64_13] : memref<21x96xf32, #tpu.memory_space<vmem>>, vector<1x16xf32>
    %c0_14 = arith.constant 0 : index
    %c80 = arith.constant 80 : index
    %11 = vector.load %arg2[%c0_14, %c80] : memref<21x96xf32, #tpu.memory_space<vmem>>, vector<16x16xf32>
    %c16_15 = arith.constant 16 : index
    %c80_16 = arith.constant 80 : index
    %12 = vector.load %arg2[%c16_15, %c80_16] : memref<21x96xf32, #tpu.memory_space<vmem>>, vector<1x16xf32>
    %cst = arith.constant dense<0.000000e+00> : vector<16xf32>
    %13 = vector.multi_reduction <add>, %0, %cst [1] : vector<16x16xf32> to vector<16xf32>
    %14 = vector.shape_cast %13 : vector<16xf32> to vector<16x1xf32>
    %cst_17 = arith.constant 1.600000e+01 : f32
    %15 = vector.broadcast %cst_17 : f32 to vector<16x1xf32>
    %16 = arith.divf %14, %15 : vector<16x1xf32>
    %17 = vector.broadcast %16 : vector<16x1xf32> to vector<16x16xf32>
    %18 = arith.subf %0, %17 : vector<16x16xf32>
    %19 = arith.mulf %18, %18 : vector<16x16xf32>
    %cst_18 = arith.constant dense<0.000000e+00> : vector<16xf32>
    %20 = vector.multi_reduction <add>, %19, %cst_18 [1] : vector<16x16xf32> to vector<16xf32>
    %21 = vector.shape_cast %20 : vector<16xf32> to vector<16x1xf32>
    %cst_19 = arith.constant 1.600000e+01 : f32
    %22 = vector.broadcast %cst_19 : f32 to vector<16x1xf32>
    %23 = arith.divf %21, %22 : vector<16x1xf32>
    %24 = vector.broadcast %16 : vector<16x1xf32> to vector<16x16xf32>
    %25 = arith.subf %0, %24 : vector<16x16xf32>
    %cst_20 = arith.constant 9.99999997E-7 : f32
    %26 = vector.broadcast %cst_20 : f32 to vector<16x1xf32>
    %27 = arith.addf %23, %26 : vector<16x1xf32>
    %28 = math.rsqrt %27 : vector<16x1xf32>
    %29 = vector.broadcast %28 : vector<16x1xf32> to vector<16x16xf32>
    %30 = arith.mulf %25, %29 : vector<16x16xf32>
    %31 = vector.broadcast %1 : vector<1x16xf32> to vector<16x16xf32>
    %32 = arith.mulf %30, %31 : vector<16x16xf32>
    %33 = vector.broadcast %2 : vector<1x16xf32> to vector<16x16xf32>
    %34 = arith.addf %32, %33 : vector<16x16xf32>
    %cst_21 = arith.constant dense<0.000000e+00> : vector<16x48xf32>
    %35 = tpu.matmul %34, %5, %cst_21 {dimension_numbers = #tpu.dot_dimension_numbers<[1], [0], [0], [1], [0, 0, 1, 1], [], []>} : vector<16x16xf32>, vector<16x48xf32>, vector<16x48xf32> -> vector<16x48xf32>
    %36 = vector.broadcast %6 : vector<1x48xf32> to vector<16x48xf32>
    %37 = arith.addf %35, %36 : vector<16x48xf32>
    %38 = vector.extract_strided_slice %37 {offsets = [0, 0], sizes = [16, 16], strides = [1, 1]} : vector<16x48xf32> to vector<16x16xf32>
    %39 = vector.extract_strided_slice %37 {offsets = [0, 16], sizes = [16, 16], strides = [1, 1]} : vector<16x48xf32> to vector<16x16xf32>
    %40 = vector.extract_strided_slice %37 {offsets = [0, 32], sizes = [16, 16], strides = [1, 1]} : vector<16x48xf32> to vector<16x16xf32>
    %41 = vector.extract_strided_slice %38 {offsets = [0, 0], sizes = [8, 16], strides = [1, 1]} : vector<16x16xf32> to vector<8x16xf32>
    %42 = vector.extract_strided_slice %39 {offsets = [0, 0], sizes = [8, 16], strides = [1, 1]} : vector<16x16xf32> to vector<8x16xf32>
    %43 = vector.extract_strided_slice %40 {offsets = [0, 0], sizes = [8, 16], strides = [1, 1]} : vector<16x16xf32> to vector<8x16xf32>
    %44 = tpu.transpose %42, [1, 0] : vector<8x16xf32> -> vector<16x8xf32>
    %cst_22 = arith.constant dense<0.000000e+00> : vector<8x8xf32>
    %45 = tpu.matmul %41, %44, %cst_22 {dimension_numbers = #tpu.dot_dimension_numbers<[1], [0], [0], [1], [0, 0, 1, 1], [], []>} : vector<8x16xf32>, vector<16x8xf32>, vector<8x8xf32> -> vector<8x8xf32>
    %46 = tpu.transpose %45, [1, 0] : vector<8x8xf32> -> vector<8x8xf32>
    %47 = arith.addf %45, %46 : vector<8x8xf32>
    %cst_23 = arith.constant 5.000000e-01 : f32
    %48 = vector.broadcast %cst_23 : f32 to vector<8x8xf32>
    %49 = arith.mulf %47, %48 : vector<8x8xf32>
    %cst_24 = arith.constant dense<0xFF800000> : vector<8xf32>
    %50 = vector.multi_reduction <maximumf>, %49, %cst_24 [1] : vector<8x8xf32> to vector<8xf32>
    %51 = vector.shape_cast %50 : vector<8xf32> to vector<8x1xf32>
    %52 = vector.broadcast %51 : vector<8x1xf32> to vector<8x8xf32>
    %53 = arith.subf %49, %52 : vector<8x8xf32>
    %54 = math.exp %53 : vector<8x8xf32>
    %cst_25 = arith.constant dense<0.000000e+00> : vector<8xf32>
    %55 = vector.multi_reduction <add>, %54, %cst_25 [1] : vector<8x8xf32> to vector<8xf32>
    %56 = vector.shape_cast %55 : vector<8xf32> to vector<8x1xf32>
    %57 = vector.broadcast %56 : vector<8x1xf32> to vector<8x8xf32>
    %58 = arith.divf %54, %57 : vector<8x8xf32>
    %59 = tpu.transpose %58, [1, 0] : vector<8x8xf32> -> vector<8x8xf32>
    %60 = arith.addf %58, %59 : vector<8x8xf32>
    %cst_26 = arith.constant 5.000000e-01 : f32
    %61 = vector.broadcast %cst_26 : f32 to vector<8x8xf32>
    %62 = arith.mulf %60, %61 : vector<8x8xf32>
    %c0_27 = arith.constant 0 : index
    %c0_28 = arith.constant 0 : index
    %c0_29 = arith.constant 0 : index
    %c0_30 = arith.constant 0 : index
    %63 = vector.load %arg4[%c0_27, %c0_28, %c0_29, %c0_30] : memref<2x1x8x8xf32, #tpu.memory_space<vmem>>, vector<1x1x8x8xf32>
    %64 = vector.shape_cast %63 : vector<1x1x8x8xf32> to vector<8x8xf32>
    %65 = vector.shape_cast %62 : vector<8x8xf32> to vector<1x1x8x8xf32>
    tpu.vector_store %arg4[%c0_27, %c0_28, %c0_29, %c0_30], %65 {strides = array<i32>} : memref<2x1x8x8xf32, #tpu.memory_space<vmem>>, vector<1x1x8x8xf32>,
    %cst_31 = arith.constant dense<0.000000e+00> : vector<8x16xf32>
    %66 = tpu.matmul %62, %43, %cst_31 {dimension_numbers = #tpu.dot_dimension_numbers<[1], [0], [0], [1], [0, 0, 1, 1], [], []>} : vector<8x8xf32>, vector<8x16xf32>, vector<8x16xf32> -> vector<8x16xf32>
    %cst_32 = arith.constant dense<0.000000e+00> : vector<8x16xf32>
    %67 = tpu.matmul %66, %7, %cst_32 {dimension_numbers = #tpu.dot_dimension_numbers<[1], [0], [0], [1], [0, 0, 1, 1], [], []>} : vector<8x16xf32>, vector<16x16xf32>, vector<8x16xf32> -> vector<8x16xf32>
    %68 = vector.broadcast %8 : vector<1x16xf32> to vector<8x16xf32>
    %69 = arith.addf %67, %68 : vector<8x16xf32>
    %70 = vector.extract_strided_slice %0 {offsets = [0, 0], sizes = [8, 16], strides = [1, 1]} : vector<16x16xf32> to vector<8x16xf32>
    %71 = arith.addf %69, %70 : vector<8x16xf32>
    %cst_33 = arith.constant dense<0.000000e+00> : vector<8xf32>
    %72 = vector.multi_reduction <add>, %71, %cst_33 [1] : vector<8x16xf32> to vector<8xf32>
    %73 = vector.shape_cast %72 : vector<8xf32> to vector<8x1xf32>
    %cst_34 = arith.constant 1.600000e+01 : f32
    %74 = vector.broadcast %cst_34 : f32 to vector<8x1xf32>
    %75 = arith.divf %73, %74 : vector<8x1xf32>
    %76 = vector.broadcast %75 : vector<8x1xf32> to vector<8x16xf32>
    %77 = arith.subf %71, %76 : vector<8x16xf32>
    %78 = arith.mulf %77, %77 : vector<8x16xf32>
    %cst_35 = arith.constant dense<0.000000e+00> : vector<8xf32>
    %79 = vector.multi_reduction <add>, %78, %cst_35 [1] : vector<8x16xf32> to vector<8xf32>
    %80 = vector.shape_cast %79 : vector<8xf32> to vector<8x1xf32>
    %cst_36 = arith.constant 1.600000e+01 : f32
    %81 = vector.broadcast %cst_36 : f32 to vector<8x1xf32>
    %82 = arith.divf %80, %81 : vector<8x1xf32>
    %83 = vector.broadcast %75 : vector<8x1xf32> to vector<8x16xf32>
    %84 = arith.subf %71, %83 : vector<8x16xf32>
    %cst_37 = arith.constant 9.99999997E-7 : f32
    %85 = vector.broadcast %cst_37 : f32 to vector<8x1xf32>
    %86 = arith.addf %82, %85 : vector<8x1xf32>
    %87 = math.rsqrt %86 : vector<8x1xf32>
    %88 = vector.broadcast %87 : vector<8x1xf32> to vector<8x16xf32>
    %89 = arith.mulf %84, %88 : vector<8x16xf32>
    %90 = vector.broadcast %3 : vector<1x16xf32> to vector<8x16xf32>
    %91 = arith.mulf %89, %90 : vector<8x16xf32>
    %92 = vector.broadcast %4 : vector<1x16xf32> to vector<8x16xf32>
    %93 = arith.addf %91, %92 : vector<8x16xf32>
    %cst_38 = arith.constant dense<0.000000e+00> : vector<8x16xf32>
    %94 = tpu.matmul %93, %9, %cst_38 {dimension_numbers = #tpu.dot_dimension_numbers<[1], [0], [0], [1], [0, 0, 1, 1], [], []>} : vector<8x16xf32>, vector<16x16xf32>, vector<8x16xf32> -> vector<8x16xf32>
    %95 = vector.broadcast %10 : vector<1x16xf32> to vector<8x16xf32>
    %96 = arith.addf %94, %95 : vector<8x16xf32>
    %cst_39 = arith.constant 0.000000e+00 : f32
    %97 = vector.broadcast %cst_39 : f32 to vector<8x16xf32>
    %98 = arith.maximumf %96, %97 : vector<8x16xf32>
    %cst_40 = arith.constant dense<0.000000e+00> : vector<8x16xf32>
    %99 = tpu.matmul %98, %11, %cst_40 {dimension_numbers = #tpu.dot_dimension_numbers<[1], [0], [0], [1], [0, 0, 1, 1], [], []>} : vector<8x16xf32>, vector<16x16xf32>, vector<8x16xf32> -> vector<8x16xf32>
    %100 = vector.broadcast %12 : vector<1x16xf32> to vector<8x16xf32>
    %101 = arith.addf %99, %100 : vector<8x16xf32>
    %102 = arith.addf %101, %71 : vector<8x16xf32>
    %c0_41 = arith.constant 0 : index
    %c0_42 = arith.constant 0 : index
    %103 = vector.load %arg3[%c0_41, %c0_42] : memref<16x16xf32, #tpu.memory_space<vmem>>, vector<8x16xf32>
    tpu.vector_store %arg3[%c0_41, %c0_42], %102 {strides = array<i32>} : memref<16x16xf32, #tpu.memory_space<vmem>>, vector<8x16xf32>,
    %104 = vector.extract_strided_slice %38 {offsets = [8, 0], sizes = [8, 16], strides = [1, 1]} : vector<16x16xf32> to vector<8x16xf32>
    %105 = vector.extract_strided_slice %39 {offsets = [8, 0], sizes = [8, 16], strides = [1, 1]} : vector<16x16xf32> to vector<8x16xf32>
    %106 = vector.extract_strided_slice %40 {offsets = [8, 0], sizes = [8, 16], strides = [1, 1]} : vector<16x16xf32> to vector<8x16xf32>
    %107 = tpu.transpose %105, [1, 0] : vector<8x16xf32> -> vector<16x8xf32>
    %cst_43 = arith.constant dense<0.000000e+00> : vector<8x8xf32>
    %108 = tpu.matmul %104, %107, %cst_43 {dimension_numbers = #tpu.dot_dimension_numbers<[1], [0], [0], [1], [0, 0, 1, 1], [], []>} : vector<8x16xf32>, vector<16x8xf32>, vector<8x8xf32> -> vector<8x8xf32>
    %109 = tpu.transpose %108, [1, 0] : vector<8x8xf32> -> vector<8x8xf32>
    %110 = arith.addf %108, %109 : vector<8x8xf32>
    %cst_44 = arith.constant 5.000000e-01 : f32
    %111 = vector.broadcast %cst_44 : f32 to vector<8x8xf32>
    %112 = arith.mulf %110, %111 : vector<8x8xf32>
    %cst_45 = arith.constant dense<0xFF800000> : vector<8xf32>
    %113 = vector.multi_reduction <maximumf>, %112, %cst_45 [1] : vector<8x8xf32> to vector<8xf32>
    %114 = vector.shape_cast %113 : vector<8xf32> to vector<8x1xf32>
    %115 = vector.broadcast %114 : vector<8x1xf32> to vector<8x8xf32>
    %116 = arith.subf %112, %115 : vector<8x8xf32>
    %117 = math.exp %116 : vector<8x8xf32>
    %cst_46 = arith.constant dense<0.000000e+00> : vector<8xf32>
    %118 = vector.multi_reduction <add>, %117, %cst_46 [1] : vector<8x8xf32> to vector<8xf32>
    %119 = vector.shape_cast %118 : vector<8xf32> to vector<8x1xf32>
    %120 = vector.broadcast %119 : vector<8x1xf32> to vector<8x8xf32>
    %121 = arith.divf %117, %120 : vector<8x8xf32>
    %122 = tpu.transpose %121, [1, 0] : vector<8x8xf32> -> vector<8x8xf32>
    %123 = arith.addf %121, %122 : vector<8x8xf32>
    %cst_47 = arith.constant 5.000000e-01 : f32
    %124 = vector.broadcast %cst_47 : f32 to vector<8x8xf32>
    %125 = arith.mulf %123, %124 : vector<8x8xf32>
    %c1 = arith.constant 1 : index
    %c0_48 = arith.constant 0 : index
    %c0_49 = arith.constant 0 : index
    %c0_50 = arith.constant 0 : index
    %126 = vector.load %arg4[%c1, %c0_48, %c0_49, %c0_50] : memref<2x1x8x8xf32, #tpu.memory_space<vmem>>, vector<1x1x8x8xf32>
    %127 = vector.shape_cast %126 : vector<1x1x8x8xf32> to vector<8x8xf32>
    %128 = vector.shape_cast %125 : vector<8x8xf32> to vector<1x1x8x8xf32>
    tpu.vector_store %arg4[%c1, %c0_48, %c0_49, %c0_50], %128 {strides = array<i32>} : memref<2x1x8x8xf32, #tpu.memory_space<vmem>>, vector<1x1x8x8xf32>,
    %cst_51 = arith.constant dense<0.000000e+00> : vector<8x16xf32>
    %129 = tpu.matmul %125, %106, %cst_51 {dimension_numbers = #tpu.dot_dimension_numbers<[1], [0], [0], [1], [0, 0, 1, 1], [], []>} : vector<8x8xf32>, vector<8x16xf32>, vector<8x16xf32> -> vector<8x16xf32>
    %cst_52 = arith.constant dense<0.000000e+00> : vector<8x16xf32>
    %130 = tpu.matmul %129, %7, %cst_52 {dimension_numbers = #tpu.dot_dimension_numbers<[1], [0], [0], [1], [0, 0, 1, 1], [], []>} : vector<8x16xf32>, vector<16x16xf32>, vector<8x16xf32> -> vector<8x16xf32>
    %131 = vector.broadcast %8 : vector<1x16xf32> to vector<8x16xf32>
    %132 = arith.addf %130, %131 : vector<8x16xf32>
    %133 = vector.extract_strided_slice %0 {offsets = [8, 0], sizes = [8, 16], strides = [1, 1]} : vector<16x16xf32> to vector<8x16xf32>
    %134 = arith.addf %132, %133 : vector<8x16xf32>
    %cst_53 = arith.constant dense<0.000000e+00> : vector<8xf32>
    %135 = vector.multi_reduction <add>, %134, %cst_53 [1] : vector<8x16xf32> to vector<8xf32>
    %136 = vector.shape_cast %135 : vector<8xf32> to vector<8x1xf32>
    %cst_54 = arith.constant 1.600000e+01 : f32
    %137 = vector.broadcast %cst_54 : f32 to vector<8x1xf32>
    %138 = arith.divf %136, %137 : vector<8x1xf32>
    %139 = vector.broadcast %138 : vector<8x1xf32> to vector<8x16xf32>
    %140 = arith.subf %134, %139 : vector<8x16xf32>
    %141 = arith.mulf %140, %140 : vector<8x16xf32>
    %cst_55 = arith.constant dense<0.000000e+00> : vector<8xf32>
    %142 = vector.multi_reduction <add>, %141, %cst_55 [1] : vector<8x16xf32> to vector<8xf32>
    %143 = vector.shape_cast %142 : vector<8xf32> to vector<8x1xf32>
    %cst_56 = arith.constant 1.600000e+01 : f32
    %144 = vector.broadcast %cst_56 : f32 to vector<8x1xf32>
    %145 = arith.divf %143, %144 : vector<8x1xf32>
    %146 = vector.broadcast %138 : vector<8x1xf32> to vector<8x16xf32>
    %147 = arith.subf %134, %146 : vector<8x16xf32>
    %cst_57 = arith.constant 9.99999997E-7 : f32
    %148 = vector.broadcast %cst_57 : f32 to vector<8x1xf32>
    %149 = arith.addf %145, %148 : vector<8x1xf32>
    %150 = math.rsqrt %149 : vector<8x1xf32>
    %151 = vector.broadcast %150 : vector<8x1xf32> to vector<8x16xf32>
    %152 = arith.mulf %147, %151 : vector<8x16xf32>
    %153 = vector.broadcast %3 : vector<1x16xf32> to vector<8x16xf32>
    %154 = arith.mulf %152, %153 : vector<8x16xf32>
    %155 = vector.broadcast %4 : vector<1x16xf32> to vector<8x16xf32>
    %156 = arith.addf %154, %155 : vector<8x16xf32>
    %cst_58 = arith.constant dense<0.000000e+00> : vector<8x16xf32>
    %157 = tpu.matmul %156, %9, %cst_58 {dimension_numbers = #tpu.dot_dimension_numbers<[1], [0], [0], [1], [0, 0, 1, 1], [], []>} : vector<8x16xf32>, vector<16x16xf32>, vector<8x16xf32> -> vector<8x16xf32>
    %158 = vector.broadcast %10 : vector<1x16xf32> to vector<8x16xf32>
    %159 = arith.addf %157, %158 : vector<8x16xf32>
    %cst_59 = arith.constant 0.000000e+00 : f32
    %160 = vector.broadcast %cst_59 : f32 to vector<8x16xf32>
    %161 = arith.maximumf %159, %160 : vector<8x16xf32>
    %cst_60 = arith.constant dense<0.000000e+00> : vector<8x16xf32>
    %162 = tpu.matmul %161, %11, %cst_60 {dimension_numbers = #tpu.dot_dimension_numbers<[1], [0], [0], [1], [0, 0, 1, 1], [], []>} : vector<8x16xf32>, vector<16x16xf32>, vector<8x16xf32> -> vector<8x16xf32>
    %163 = vector.broadcast %12 : vector<1x16xf32> to vector<8x16xf32>
    %164 = arith.addf %162, %163 : vector<8x16xf32>
    %165 = arith.addf %164, %134 : vector<8x16xf32>
    %c8 = arith.constant 8 : index
    %c0_61 = arith.constant 0 : index
    %166 = vector.load %arg3[%c8, %c0_61] : memref<16x16xf32, #tpu.memory_space<vmem>>, vector<8x16xf32>
    tpu.vector_store %arg3[%c8, %c0_61], %165 {strides = array<i32>} : memref<16x16xf32, #tpu.memory_space<vmem>>, vector<8x16xf32>,
    return
  }
  func.func @transform_0(%arg0: i32) -> (i32, i32) {
    %c0_i32 = arith.constant 0 : i32
    %c0_i32_0 = arith.constant 0 : i32
    %c0_i32_1 = arith.constant 0 : i32
    return %c0_i32, %c0_i32_0 : i32, i32
  }
  func.func @transform_1(%arg0: i32) -> (i32, i32) {
    %c0_i32 = arith.constant 0 : i32
    %c0_i32_0 = arith.constant 0 : i32
    %c0_i32_1 = arith.constant 0 : i32
    return %c0_i32, %c0_i32_0 : i32, i32
  }
  func.func @transform_2(%arg0: i32) -> (i32, i32) {
    %c0_i32 = arith.constant 0 : i32
    %c0_i32_0 = arith.constant 0 : i32
    %c0_i32_1 = arith.constant 0 : i32
    return %c0_i32, %c0_i32_0 : i32, i32
  }
  func.func @transform_3(%arg0: i32) -> (i32, i32, i32, i32) {
    %c0_i32 = arith.constant 0 : i32
    %c0_i32_0 = arith.constant 0 : i32
    %c0_i32_1 = arith.constant 0 : i32
    %c0_i32_2 = arith.constant 0 : i32
    %c0_i32_3 = arith.constant 0 : i32
    return %c0_i32, %c0_i32_0, %c0_i32_1, %c0_i32_2 : i32, i32, i32, i32
  }
}

</mosaic_0001>

<bundles_post_ra>
// kernel: tpu_custom_call.1
= control target key start
LH: loop header
LB: loop body
LE: loop exit
PB: predicated region body
PF: predicated region fallthrough
CT: control target
= control target key end

     0   :  { %9 = vsyncpa [#allocation3], 0  ;;  %s1620_s0 = inlined_call_operand.hbm [shape: f32[16,16], index: 0, kind: input, shape index: {}]   ;;  %s1621_s1 = inlined_call_operand.hbm [shape: f32[21,96], index: 1, kind: input, shape index: {}]   ;;  %s1622_s2 = inlined_call_operand.hbm [shape: f32[16,16], index: 2, kind: output, shape index: {0}]   ;;  %s1623_s3 = inlined_call_operand.hbm [shape: f32[2,1,8,8], index: 3, kind: output, shape index: {1}]  }
   0x1   :  { %10 = vsyncpa [#allocation6], 0 }
   0x2   :  { %11 = vsyncpa [#allocation4], 0 }
   0x3   :  { %12 = vsyncpa [#allocation9], 0  ;;  %s1428_s12 = smov [#allocation2]  }
   0x4   :  { %s18_s13 = sshll.u32 %s1428_s12, 4  ;;  %s19_s13 = int_to_ptr.vmem [resolvable:$true] %s18_s13 }
   0x5   :  { %s1348_s14 = scalar_lea.vmem %s19_s13, 256  ;;  %p1353_p1 = scmp.lt.s32.totalorder %s19_s13, %s19_s13 }
   0x6   :  { %p1349_p0 = scmp.ne.s32.totalorder %s19_s13, %s1348_s14  ;;  %p1354_p2 = scmp.lt.s32.totalorder %s1348_s14, %s1348_s14 }
   0x8   :  { %p1355_p3 = por %p1354_p2, %p1353_p1 }
   0xa   :  { %p1356_p4 = pnand %p1355_p3, %p1349_p0 }
   0xc   :  { %1359 = shalt.err (!%p1356_p4)
}
   0xd   :  { %s1429_s15 = smov 128   ;;  %s1430_s16 = smov 8  }
   0xe   :  { %24 = dma.hbm_to_vmem [thread:$0]  %s1620_s0, 256, %s19_s13, [#allocation3], %s1429_s15, %s1429_s15, %s1430_s16  }
   0xf   :  { %s1431_s19 = smov [#allocation5]  }
  0x10   :  { %s30_s20 = sshll.u32 %s1431_s19, 4  ;;  %s31_s20 = int_to_ptr.vmem [resolvable:$true] %s30_s20 }
  0x11   :  { %s1368_s21 = scalar_lea.vmem %s31_s20, 384  ;;  %p1373_p6 = scmp.lt.s32.totalorder %s31_s20, %s31_s20 }
  0x12   :  { %p1369_p5 = scmp.ne.s32.totalorder %s31_s20, %s1368_s21  ;;  %p1374_p7 = scmp.lt.s32.totalorder %s1368_s21, %s1368_s21 }
  0x14   :  { %p1375_p8 = por %p1374_p7, %p1373_p6 }
  0x16   :  { %p1376_p9 = pnand %p1375_p8, %p1369_p5 }
  0x18   :  { %1379 = shalt.err (!%p1376_p9)
}
  0x19   :  { %36 = dma.hbm_to_vmem [thread:$0]  %s1621_s1, 384, %s31_s20, [#allocation6], %s1429_s15, %s1429_s15, %s1430_s16  }
  0x1a   :  { %1420 = dma.done.wait [#allocation3], 256  }
  0x1b   :  { %1421 = vsyncadd [#allocation3], 4294967040 }
  0x1c   :  { %1422 = dma.done.wait [#allocation6], 384  }
  0x1d   :  { %1423 = vsyncadd [#allocation6], 4294966912  ;;  %vm52_vm0 = vcmask 130048   ;;  %v1473_v0 = vld [vmem:[#allocation2] sm:$0xff]  ;;  %v1475_v1 = vld [vmem:[#allocation2 + $0x8] sm:$0xff]  ;;  %v1432_v32 = vmov 0.0  }
  0x1e   :  { %v53_v2 = vsel %vm52_vm0, %v1473_v0, 0.0  ;;  %v56_v3 = vsel %vm52_vm0, %v1475_v1, 0.0  ;;  %v1485_v14 = vld [vmem:[#allocation5 + $0x8] sm:$0xff]  ;;  %v1489_v15 = vld [vmem:[#allocation5] sm:$0xff]  ;;  %v1193_v23 = vld [vmem:[#allocation5 + $0x11] ss:$0 sm:$0xff]  ;;  %1249 = vmatprep.subr.mxu1 %v1432_v32 }
  0x1f   :  { %54 = vadd.xlane.f32.xlu0 %v53_v2  ;;  %1242 = vmatprep.subr.mxu0 %v1485_v14  ;;  %v1194_v25 = vld [vmem:[#allocation5 + $0x12] ss:$0 sm:$0xff]  ;;  %vm1433_vm1 = vmmov 0   ;;  %v1503_v34 = vld [vmem:[#allocation5 + $0x10] ss:$0 sm:$0xff]  ;;  %s1434_s0 = smov 112  }
  0x20   :  { %1243 = vmatpush3.msra.mxu0 %v1485_v14  ;;  %1251 = vmatprep.mubr.msk.f32.mxu1 %vm1433_vm1, %v1432_v32  ;;  %vm288_vm2 = vcmask 64512   ;;  %s1435_s1 = smov 96   ;;  %s1436_s24 = smov 80  }
  0x21   :  { %1244 = vmatprep.subr.mxu0 %v1489_v15  ;;  %s1437_s25 = smov 64   ;;  %s1438_s26 = smov 48  }
  0x22   :  { %1245 = vmatpush3.msra.mxu0 %v1489_v15  ;;  %s1439_s27 = smov [#allocation8]  }
  0x23   :  { %57 = vadd.xlane.f32.xlu0 %v56_v3  ;;  %1254 = vmatprep.subr.mxu0 %v1432_v32  ;;  %s1176_s28 = sshll.u32 %s1439_s27, 4  ;;  %s1177_s28 = int_to_ptr.vmem [resolvable:$true] %s1176_s28 }
  0x24   :  { %s1380_s29 = scalar_lea.vmem %s1177_s28, 256  ;;  %p1385_p11 = scmp.lt.s32.totalorder %s1177_s28, %s1177_s28 }
  0x25   :  { %p1381_p10 = scmp.ne.s32.totalorder %s1177_s28, %s1380_s29  ;;  %p1386_p12 = scmp.lt.s32.totalorder %s1380_s29, %s1380_s29 }
  0x27   :  { %p1387_p13 = por %p1386_p12, %p1385_p11 }
  0x29   :  { %p1388_p0 = pnand %p1387_p13, %p1381_p10 }
  0xa8   :  { %v55_v4 = vpop.xlane.xlu0 %54 }
  0xa9   :  { %v60_v5 = vmul.f32 0.0625, %v55_v4 }
  0xab   :  { %v62_v6 = vsub.f32 %v1473_v0, %v60_v5 }
  0xac   :  { %v58_v7 = vpop.xlane.xlu0 %57 }
  0xad   :  { %v61_v8 = vmul.f32 0.0625, %v58_v7  ;;  %v64_v9 = vmul.f32 %v62_v6, %v62_v6 }
  0xaf   :  { %v63_v10 = vsub.f32 %v1475_v1, %v61_v8  ;;  %v66_v11 = vsel %vm52_vm0, %v64_v9, 0.0 }
  0xb0   :  { %67 = vadd.xlane.f32.xlu1 %v66_v11 }
  0xb1   :  { %v65_v12 = vmul.f32 %v63_v10, %v63_v10 }
  0xb3   :  { %v69_v13 = vsel %vm52_vm0, %v65_v12, 0.0 }
  0xb4   :  { %70 = vadd.xlane.f32.xlu1 %v69_v13 }
 0x139   :  { %v68_v16 = vpop.xlane.xlu1 %67 }
 0x13a   :  { %v72_v17 = vmul.f32 0.0625, %v68_v16 }
 0x13c   :  { %v74_v18 = vadd.f32 1e-06, %v72_v17  ;;  %v1553_v17 = vld [vmem:[#allocation5 + $0x13] ss:$0 sm:$0xff] }
 0x13d   :  { %v71_v19 = vpop.xlane.xlu1 %70 }
 0x13e   :  { %1324 = vrsqrt.f32 %v74_v18  ;;  %v73_v20 = vmul.f32 0.0625, %v71_v19  ;;  %v1555_v19 = vld [vmem:[#allocation5 + $0x14] ss:$0 sm:$0xff] }
 0x140   :  { %v75_v21 = vadd.f32 1e-06, %v73_v20 }
 0x142   :  { %1326 = vrsqrt.f32 %v75_v21 }
 0x14b   :  { %v1325_v22 = vpop.eup %1324 }
 0x14c   :  { %v78_v24 = vmul.f32 %v1325_v22, %v62_v6 }
 0x14e   :  { %v84_v26 = vmul.f32 %v1193_v23, %v78_v24 }
 0x14f   :  { %v1327_v27 = vpop.eup %1326 }
 0x150   :  { %v79_v28 = vmul.f32 %v1327_v27, %v63_v10  ;;  %v90_v29 = vadd.f32 %v1194_v25, %v84_v26 }
 0x152   :  { %v85_v30 = vmul.f32 %v1193_v23, %v79_v28  ;;  %1246 = vmatprep.mubr.msk.f32.mxu0 %vm52_vm0, %v90_v29 }
 0x154   :  { %v91_v31 = vadd.f32 %v1194_v25, %v85_v30 }
 0x156   :  { %1247 = vmatmul.mubr.msk.f32.vlgmr.msra.gmra.mxu0 %vm52_vm0, %v91_v31 }
 0x157   :  { %1256 = vmatprep.mubr.msk.f32.mxu0 %vm1433_vm1, %v1432_v32 }
 0x216   :  { %v1501_v33 = vpop.f32.mrf.mxu0 }
 0x217   :  { %v174_v4 = vadd.f32 %v1501_v33, %v1503_v34 }
 0x218   :  { %v168_v35 = vpop.f32.mrf.mxu0 }
 0x219   :  { %v169_v36 = vadd.f32 %v1503_v34, %v168_v35 }
 0x21b   :  { %178 = vrot.lane.b32.xlu0 %v169_v36, %s1434_s0 }
 0x28d   :  { %v179_v37 = vpop.permute.xlu0 %178 }
 0x28e   :  { %1250 = vmatpush3.xpose.msk.msra.mxu1 %vm52_vm0, %v179_v37 }
 0x28f   :  { %1259 = vmatprep.subr.mxu1 %v1432_v32 }
 0x291   :  { %1252 = vmatmul.mubr.msk.f32.vlgmr.msra.gmra.mxu1 %vm52_vm0, %v169_v36 }
 0x292   :  { %1263 = vmatprep.mubr.msk.f32.mxu1 %vm1433_vm1, %v1432_v32 }
 0x351   :  { %v250_v38 = vpop.f32.mrf.mxu1 }
 0x352   :  { %254 = vxpose.xlu1.b32.start.end [1/1] (short) (narrow) %v250_v38, 8 }
 0x353   :  { %v1253_v39 = vpop.f32.mrf.mxu1 }
 0x3ce   :  { %v270_v40 = vpop.trf.xlu1 }
 0x3cf   :  { %v286_v41 = vadd.f32 %v270_v40, %v250_v38 }
 0x3d1   :  { %v287_v42 = vmul.f32 0.5, %v286_v41 }
 0x3d3   :  { %v289_v43 = vsel %vm288_vm2, %v287_v42, -inf }
 0x3d4   :  { %290 = vmax.xlane.f32.xlu0 %v289_v43 }
 0x3ea   :  { %335 = vrot.lane.b32.xlu0 %v169_v36, %s1435_s1 }
 0x45d   :  { %v291_v44 = vpop.xlane.xlu0 %290 }
 0x45e   :  { %v292_v45 = vsub.f32 %v287_v42, %v291_v44 }
 0x460   :  { %v293_v46 = vmul.f32 1.442695, %v292_v45 }
 0x461   :  { %v336_v47 = vpop.permute.xlu0 %335 }
 0x462   :  { %1328 = vpow2.f32 %v293_v46  ;;  %1255 = vmatpush3.msra.mxu0 %v336_v47 }
 0x463   :  { %1266 = vmatprep.subr.mxu0 %v1432_v32 }
 0x46f   :  { %v1329_v48 = vpop.eup %1328 }
 0x470   :  { %v295_v49 = vsel %vm288_vm2, %v1329_v48, 0.0 }
 0x471   :  { %296 = vadd.xlane.f32.xlu1 %v295_v49 }
 0x482   :  { %415 = vrot.lane.b32.xlu1 %v1485_v14, %s1436_s24 }
 0x486   :  { %420 = vrot.lane.b32.xlu1 %v1503_v34, %s1436_s24 }
 0x4fa   :  { %v297_v50 = vpop.xlane.xlu1 %296 }
 0x4fb   :  { %1330 = vrcp.f32 %v297_v50 }
 0x4fe   :  { %v416_v53 = vpop.permute.xlu1 %415 }
 0x4ff   :  { %1260 = vmatpush3.msra.mxu1 %v416_v53 }
 0x500   :  { %1261 = vmatprep.subr.mxu1 %v1432_v32 }
 0x502   :  { %v1528_v60 = vpop.permute.xlu1 %420 }
 0x508   :  { %v1331_v51 = vpop.eup %1330 }
 0x509   :  { %v299_v52 = vmul.f32 %v1331_v51, %v1329_v48 }
 0x50b   :  { %300 = vxpose.xlu0.b32.start.end [1/1] (short) (narrow) %v299_v52, 8 }
 0x534   :  { %413 = vrot.lane.b32.xlu0 %v1489_v15, %s1436_s24 }
 0x587   :  { %v316_v54 = vpop.trf.xlu0 }
 0x588   :  { %v332_v55 = vadd.f32 %v316_v54, %v299_v52 }
 0x58a   :  { %v333_v56 = vmul.f32 0.5, %v332_v55 }
 0x58c   :  { %334 = vst.msk [vmem:[#allocation8] sm:$0xff] %vm288_vm2, %v333_v56  ;;  %1257 = vmatmul.mubr.msk.f32.vlgmr.msra.gmra.mxu0 %vm288_vm2, %v333_v56 }
 0x58d   :  { %1270 = vmatprep.mubr.msk.f32.mxu0 %vm1433_vm1, %v1432_v32 }
 0x5a6   :  { %v414_v57 = vpop.permute.xlu0 %413 }
 0x5a7   :  { %1262 = vmatpush3.msra.mxu1 %v414_v57 }
 0x5a8   :  { %1273 = vmatprep.subr.mxu1 %v1432_v32 }
 0x64c   :  { %v407_v58 = vpop.f32.mrf.mxu0 }
 0x64d   :  { %1264 = vmatmul.mubr.msk.f32.vlgmr.msra.gmra.mxu1 %vm52_vm0, %v407_v58 }
 0x64e   :  { %v1258_v59 = vpop.f32.mrf.mxu0  ;;  %1277 = vmatprep.mubr.msk.f32.mxu1 %vm1433_vm1, %v1432_v32 }
 0x70d   :  { %v492_v61 = vpop.f32.mrf.mxu1 }
 0x70e   :  { %v493_v62 = vadd.f32 %v492_v61, %v1528_v60 }
 0x70f   :  { %v1265_v63 = vpop.f32.mrf.mxu1 }
 0x710   :  { %v1532_v2 = vadd.f32 %v493_v62, %v1473_v0 }
 0x712   :  { %v497_v3 = vsel %vm52_vm0, %v1532_v2, 0.0 }
 0x713   :  { %498 = vadd.xlane.f32.xlu1 %v497_v3 }
 0x724   :  { %522 = vrot.lane.b32.xlu1 %v1485_v14, %s1437_s25 }
 0x728   :  { %520 = vrot.lane.b32.xlu1 %v1489_v15, %s1437_s25 }
 0x72c   :  { %688 = vrot.lane.b32.xlu1 %v174_v4, %s1434_s0 }
 0x79c   :  { %v499_v5 = vpop.xlane.xlu1 %498 }
 0x79d   :  { %v500_v6 = vmul.f32 0.0625, %v499_v5 }
 0x79f   :  { %v501_v0 = vsub.f32 %v1532_v2, %v500_v6 }
 0x7a0   :  { %v1544_v7 = vpop.permute.xlu1 %522 }
 0x7a1   :  { %v502_v8 = vmul.f32 %v501_v0, %v501_v0  ;;  %1267 = vmatpush3.msra.mxu0 %v1544_v7 }
 0x7a2   :  { %1268 = vmatprep.subr.mxu0 %v1432_v32 }
 0x7a3   :  { %v503_v9 = vsel %vm52_vm0, %v502_v8, 0.0 }
 0x7a4   :  { %504 = vadd.xlane.f32.xlu0 %v503_v9  ;;  %v1549_v10 = vpop.permute.xlu1 %520 }
 0x7a5   :  { %1269 = vmatpush3.msra.mxu0 %v1549_v10 }
 0x7a6   :  { %1280 = vmatprep.subr.mxu0 %v1432_v32 }
 0x7a8   :  { %v689_v22 = vpop.permute.xlu1 %688 }
 0x82d   :  { %v505_v11 = vpop.xlane.xlu0 %504 }
 0x82e   :  { %v506_v12 = vmul.f32 0.0625, %v505_v11 }
 0x830   :  { %v507_v13 = vadd.f32 1e-06, %v506_v12 }
 0x832   :  { %1332 = vrsqrt.f32 %v507_v13 }
 0x83f   :  { %v1333_v16 = vpop.eup %1332 }
 0x840   :  { %v509_v18 = vmul.f32 %v1333_v16, %v501_v0 }
 0x842   :  { %v514_v20 = vmul.f32 %v1553_v17, %v509_v18 }
 0x844   :  { %v519_v21 = vadd.f32 %v1555_v19, %v514_v20 }
 0x846   :  { %1271 = vmatmul.mubr.msk.f32.vlgmr.msra.gmra.mxu0 %vm52_vm0, %v519_v21 }
 0x847   :  { %1281 = vmatpush3.xpose.msk.msra.mxu0 %vm52_vm0, %v689_v22  ;;  %1282 = vmatprep.mubr.msk.f32.mxu0 %vm1433_vm1, %v1432_v32 }
 0x848   :  { %1290 = vmatprep.subr.mxu0 %v1432_v32 }
 0x84a   :  { %1283 = vmatmul.mubr.msk.f32.vlgmr.msra.gmra.mxu0 %vm52_vm0, %v174_v4 }
 0x84b   :  { %1291 = vmatpush3.msra.mxu0 %v416_v53  ;;  %1294 = vmatprep.mubr.msk.f32.mxu0 %vm1433_vm1, %v1432_v32 }
 0x84c   :  { %1292 = vmatprep.subr.mxu0 %v1432_v32 }
 0x84d   :  { %1293 = vmatpush3.msra.mxu0 %v414_v57 }
 0x84e   :  { %1304 = vmatprep.subr.mxu0 %v1432_v32 }
 0x906   :  { %v598_v23 = vpop.f32.mrf.mxu0 }
 0x908   :  { %v1272_v24 = vpop.f32.mrf.mxu0 }
 0x90a   :  { %v760_v25 = vpop.f32.mrf.mxu0 }
 0x90b   :  { %764 = vxpose.xlu1.b32.start.end [1/1] (short) (narrow) %v760_v25, 8 }
 0x90c   :  { %v1284_v26 = vpop.f32.mrf.mxu0 }
 0x929   :  { %845 = vrot.lane.b32.xlu1 %v174_v4, %s1435_s1 }
 0x987   :  { %v780_v27 = vpop.trf.xlu1 }
 0x988   :  { %v796_v28 = vadd.f32 %v780_v27, %v760_v25 }
 0x98a   :  { %v797_v29 = vmul.f32 0.5, %v796_v28 }
 0x98c   :  { %v798_v30 = vsel %vm288_vm2, %v797_v29, -inf }
 0x98d   :  { %799 = vmax.xlane.f32.xlu0 %v798_v30 }
 0x99b   :  { %v846_v45 = vpop.permute.xlu1 %845 }
 0xa16   :  { %v800_v31 = vpop.xlane.xlu0 %799 }
 0xa17   :  { %v801_v33 = vsub.f32 %v797_v29, %v800_v31 }
 0xa19   :  { %v802_v35 = vmul.f32 1.442695, %v801_v33 }
 0xa1b   :  { %1334 = vpow2.f32 %v802_v35 }
 0xa28   :  { %v1335_v36 = vpop.eup %1334 }
 0xa29   :  { %v804_v37 = vsel %vm288_vm2, %v1335_v36, 0.0 }
 0xa2a   :  { %805 = vadd.xlane.f32.xlu0 %v804_v37 }
 0xa40   :  { %526 = vrot.lane.b32.xlu0 %v1503_v34, %s1437_s25 }
 0xa44   :  { %605 = vrot.lane.b32.xlu0 %v1485_v14, %s1438_s26 }
 0xa48   :  { %603 = vrot.lane.b32.xlu0 %v1489_v15, %s1438_s26 }
 0xab3   :  { %v806_v38 = vpop.xlane.xlu0 %805 }
 0xab4   :  { %1336 = vrcp.f32 %v806_v38 }
 0xab7   :  { %v527_v39 = vpop.permute.xlu0 %526 }
 0xab8   :  { %v599_v40 = vadd.f32 %v598_v23, %v527_v39 }
 0xaba   :  { %v602_v42 = vmax.f32 %v599_v40, 0.0 }
 0xabb   :  { %v606_v41 = vpop.permute.xlu0 %605 }
 0xabc   :  { %1274 = vmatpush3.msra.mxu1 %v606_v41 }
 0xabd   :  { %1275 = vmatprep.subr.mxu1 %v1432_v32 }
 0xabf   :  { %v604_v43 = vpop.permute.xlu0 %603 }
 0xac0   :  { %1276 = vmatpush3.msra.mxu1 %v604_v43 }
 0xac1   :  { %v1337_v44 = vpop.eup %1336  ;;  %1278 = vmatmul.mubr.msk.f32.vlgmr.msra.gmra.mxu1 %vm52_vm0, %v602_v42  ;;  %1285 = vmatprep.subr.mxu1 %v1432_v32 }
 0xac2   :  { %1286 = vmatpush3.msra.mxu1 %v846_v45  ;;  %v808_v14 = vmul.f32 %v1337_v44, %v1335_v36  ;;  %1287 = vmatprep.mubr.msk.f32.mxu1 %vm1433_vm1, %v1432_v32 }
 0xac3   :  { %1297 = vmatprep.subr.mxu1 %v1432_v32 }
 0xac4   :  { %809 = vxpose.xlu0.b32.start.end [1/1] (short) (narrow) %v808_v14, 8 }
 0xb40   :  { %v825_v15 = vpop.trf.xlu0 }
 0xb41   :  { %v841_v46 = vadd.f32 %v825_v15, %v808_v14 }
 0xb43   :  { %v842_v47 = vmul.f32 0.5, %v841_v46 }
 0xb45   :  { %844 = vst.msk [vmem:[#allocation8 + $0x8] sm:$0xff] %vm288_vm2, %v842_v47  ;;  %1288 = vmatmul.mubr.msk.f32.vlgmr.msra.gmra.mxu1 %vm288_vm2, %v842_v47 }
 0xb46   :  { %1298 = vmatpush3.msra.mxu1 %v1544_v7  ;;  %1301 = vmatprep.mubr.msk.f32.mxu1 %vm1433_vm1, %v1432_v32 }
 0xb47   :  { %1299 = vmatprep.subr.mxu1 %v1432_v32 }
 0xb48   :  { %1300 = vmatpush3.msra.mxu1 %v1549_v10 }
 0xb81   :  { %v681_v48 = vpop.f32.mrf.mxu1 }
 0xb83   :  { %v1279_v49 = vpop.f32.mrf.mxu1 }
 0xc05   :  { %v917_v50 = vpop.f32.mrf.mxu1 }
 0xc06   :  { %1295 = vmatmul.mubr.msk.f32.vlgmr.msra.gmra.mxu0 %vm52_vm0, %v917_v50 }
 0xc07   :  { %1305 = vmatpush3.msra.mxu0 %v606_v41  ;;  %v1289_v51 = vpop.f32.mrf.mxu1  ;;  %1308 = vmatprep.mubr.msk.f32.mxu0 %vm1433_vm1, %v1432_v32 }
 0xc08   :  { %1306 = vmatprep.subr.mxu0 %v1432_v32 }
 0xc09   :  { %1307 = vmatpush3.msra.mxu0 %v604_v43 }
 0xcc6   :  { %v990_v52 = vpop.f32.mrf.mxu0 }
 0xcc7   :  { %v991_v53 = vadd.f32 %v990_v52, %v1528_v60 }
 0xcc8   :  { %v1296_v54 = vpop.f32.mrf.mxu0 }
 0xcc9   :  { %v994_v55 = vadd.f32 %v991_v53, %v1475_v1 }
 0xccb   :  { %v995_v56 = vsel %vm52_vm0, %v994_v55, 0.0 }
 0xccc   :  { %996 = vadd.xlane.f32.xlu1 %v995_v56 }
 0xcdd   :  { %609 = vrot.lane.b32.xlu1 %v1503_v34, %s1438_s26 }
 0xd55   :  { %v997_v57 = vpop.xlane.xlu1 %996 }
 0xd56   :  { %v998_v58 = vmul.f32 0.0625, %v997_v57 }
 0xd58   :  { %v999_v59 = vsub.f32 %v994_v55, %v998_v58 }
 0xd59   :  { %v610_v61 = vpop.permute.xlu1 %609 }
 0xd5a   :  { %v682_v62 = vadd.f32 %v681_v48, %v610_v61  ;;  %v1000_v63 = vmul.f32 %v999_v59, %v999_v59 }
 0xd5c   :  { %v685_v32 = vadd.f32 %v682_v62, %v1532_v2  ;;  %v1001_v3 = vsel %vm52_vm0, %v1000_v63, 0.0 }
 0xd5d   :  { %1002 = vadd.xlane.f32.xlu0 %v1001_v3 }
 0xd5e   :  { %686 = vst.msk [vmem:[#allocation7] sm:$0xff] %vm52_vm0, %v685_v32 }
 0xde6   :  { %v1003_v1 = vpop.xlane.xlu0 %1002 }
 0xde7   :  { %v1004_v60 = vmul.f32 0.0625, %v1003_v1 }
 0xde9   :  { %v1005_v4 = vadd.f32 1e-06, %v1004_v60 }
 0xdeb   :  { %1338 = vrsqrt.f32 %v1005_v4 }
 0xdf8   :  { %v1339_v5 = vpop.eup %1338 }
 0xdf9   :  { %v1007_v6 = vmul.f32 %v1339_v5, %v999_v59 }
 0xdfb   :  { %v1008_v34 = vmul.f32 %v1553_v17, %v1007_v6 }
 0xdfd   :  { %v1009_v0 = vadd.f32 %v1555_v19, %v1008_v34 }
 0xdff   :  { %1302 = vmatmul.mubr.msk.f32.vlgmr.msra.gmra.mxu1 %vm52_vm0, %v1009_v0 }
 0xebf   :  { %v1079_v7 = vpop.f32.mrf.mxu1 }
 0xec0   :  { %v1080_v8 = vadd.f32 %v1079_v7, %v527_v39 }
 0xec1   :  { %v1303_v2 = vpop.f32.mrf.mxu1 }
 0xec2   :  { %v1083_v9 = vmax.f32 %v1080_v8, 0.0 }
 0xec4   :  { %1309 = vmatmul.mubr.msk.f32.vlgmr.msra.gmra.mxu0 %vm52_vm0, %v1083_v9 }
 0xec5   :  { %1391 = shalt.err (!%p1388_p0)
}
 0xec6   :  { %1182 = dma.vmem_to_hbm [thread:$0]  %s1177_s28, 256, %s1623_s3, [#allocation9], %s1429_s15, %s1429_s15, %s1430_s16  }
 0xec7   :  { %s1440_s5 = smov [#allocation7]  }
 0xec8   :  { %s1164_s6 = sshll.u32 %s1440_s5, 4  ;;  %s1165_s6 = int_to_ptr.vmem [resolvable:$true] %s1164_s6 }
 0xec9   :  { %s1400_s7 = scalar_lea.vmem %s1165_s6, 256  ;;  %p1405_p2 = scmp.lt.s32.totalorder %s1165_s6, %s1165_s6 }
 0xeca   :  { %p1401_p1 = scmp.ne.s32.totalorder %s1165_s6, %s1400_s7  ;;  %p1406_p3 = scmp.lt.s32.totalorder %s1400_s7, %s1400_s7 }
 0xecc   :  { %p1407_p4 = por %p1406_p3, %p1405_p2 }
 0xece   :  { %p1408_p5 = pnand %p1407_p4, %p1401_p1 }
 0xf84   :  { %v1153_v10 = vpop.f32.mrf.mxu0 }
 0xf85   :  { %v1154_v11 = vadd.f32 %v1153_v10, %v610_v61 }
 0xf86   :  { %v1310_v12 = vpop.f32.mrf.mxu0 }
 0xf87   :  { %v1157_v13 = vadd.f32 %v1154_v11, %v994_v55 }
 0xf89   :  { %1158 = vst.msk [vmem:[#allocation7 + $0x8] sm:$0xff] %vm52_vm0, %v1157_v13 }
 0xf8a   :  { %1411 = shalt.err (!%p1408_p5)
}
 0xf8b   :  { %1170 = dma.vmem_to_hbm [thread:$0]  %s1165_s6, 256, %s1622_s2, [#allocation4], %s1429_s15, %s1429_s15, %s1430_s16  }
 0xf8c   :  { %1424 = dma.done.wait [#allocation4], 256  }
 0xf8d   :  { %1425 = vsyncadd [#allocation4], 4294967040 }
 0xf8e   :  { %1426 = dma.done.wait [#allocation9], 256  }
 0xf8f   :  { %1427 = vsyncadd [#allocation9], 4294967040 }
 0xf90   :  { %1189 = vsyncpa [#allocation3], 1 }
 0xf91   :  { %1190 = vsyncpa [#allocation6], 1 }
 0xf92   :  { %1191 = vsyncpa [#allocation4], 1 }
 0xf93   :  { %1192 = vsyncpa [#allocation9], 1 }

</bundles_post_ra>
